<compile_context>
chip_gen: v7x
topology: tpu7x:2x2x1
jax: 0.10.0
libtpu: 0.0.40
codegen_flags: <defaults>
</compile_context>

<pallas_src>
import jax
import jax.numpy as jnp
from jax.experimental import pallas as pl
from jax.experimental.pallas import tpu as pltpu

C_IN = 64                      # Conv(64, ...)
C_OUT = 96                     # channel width after l5
CP = 128                       # lane-padded channel width
C_HID = int(C_OUT * 0.325)     # 31, MRCnf1 hidden channels
C_HID_P = 32                   # sublane-padded hidden
A_HID = 16                     # MaxPoolingAttn hidden dim
K_COL = 4 * C_IN               # 256 = im2col depth of the 2x2 conv


def _silu(x):
    return x * jax.nn.sigmoid(x)


def _bf16(x):
    return x.astype(jnp.bfloat16)


# -----------------------------------------------------------------------------
# Fused kernel: one grid step per batch element, everything resident in VMEM.
# -----------------------------------------------------------------------------
def _ynet2b2_kernel(x_ref, w5_ref, b5_ref, w61_ref, b61_ref, w62_ref, b62_ref,
                    wa1_ref, ba1_ref, wa2_ref, ba2_ref, o_ref):
    # x_ref: (M, 256) bf16 -- im2col of one image, M = Ho*Wo
    # o_ref: (M, 128) f32  -- channels 96..127 are zero (sliced off outside)

    # ---- l5: Conv2d(64->96, k=2, s=1, p=1, bias) + SiLU as ONE K=256 matmul.
    x5 = _silu(jnp.dot(x_ref[...], w5_ref[...],
                       preferred_element_type=jnp.float32) + b5_ref[...])

    # ---- l6: MRCnf1 residual bottleneck (two 1x1 convs + SiLU each).
    # Cast policy: bf16 only at dot operands, accumulate + elementwise in f32.
    h = _silu(jnp.dot(_bf16(x5), w61_ref[...],
                      preferred_element_type=jnp.float32) + b61_ref[...])
    y = _silu(jnp.dot(_bf16(h), w62_ref[...],
                      preferred_element_type=jnp.float32) + b62_ref[...])
    x6 = x5 + y                                                     # (M,CP) f32

    # ---- l7: MaxPoolingAttn -- channel gate from the global spatial max.
    pooled = jnp.max(x6, axis=0, keepdims=True)                     # (1,CP)
    a = jnp.dot(_bf16(pooled), wa1_ref[...],
                preferred_element_type=jnp.float32) + ba1_ref[...]
    a = jnp.maximum(a, 0.0)
    g = jax.nn.sigmoid(jnp.dot(_bf16(a), wa2_ref[...],
                               preferred_element_type=jnp.float32) + ba2_ref[...])

    o_ref[...] = (x6 * g).astype(o_ref.dtype)


def _fused_call(xcol, p, M):
    N = xcol.shape[0]
    weights = (p["w5"], p["b5"], p["w61"], p["b61"], p["w62"], p["b62"],
               p["wa1"], p["ba1"], p["wa2"], p["ba2"])

    def rep(a):                 # full-array operand, same block every step
        return pl.BlockSpec(a.shape, lambda n: (0, 0))

    return pl.pallas_call(
        _ynet2b2_kernel,
        out_shape=jax.ShapeDtypeStruct((N, M, CP), jnp.float32),
        grid=(N,),
        in_specs=[pl.BlockSpec((None, M, K_COL), lambda n: (n, 0, 0))]
                 + [rep(w) for w in weights],
        out_specs=pl.BlockSpec((None, M, CP), lambda n: (n, 0, 0)),
        compiler_params=pltpu.CompilerParams(
            dimension_semantics=("parallel",),
            vmem_limit_bytes=48 * 1024 * 1024),
    )(xcol, *weights)


# -----------------------------------------------------------------------------
# Parameters
# -----------------------------------------------------------------------------
def init_params(key):
    ks = jax.random.split(key, 8)
    s = 0.05
    return {
        # NOTE: PyTorch Conv2d weights are (Cout, Cin, kH, kW); permute to
        # (kH, kW, Cin, Cout) before loading real checkpoints.
        "l5_w": jax.random.normal(ks[0], (2, 2, C_IN, C_OUT), jnp.float32) * s,
        "l5_b": jax.random.normal(ks[1], (C_OUT,), jnp.float32) * s,
        "l6_w1": jax.random.normal(ks[2], (C_OUT, C_HID), jnp.float32) * s,
        "l6_b1": jax.random.normal(ks[3], (C_HID,), jnp.float32) * s,
        "l6_w2": jax.random.normal(ks[4], (C_HID, C_OUT), jnp.float32) * s,
        "l6_b2": jax.random.normal(ks[5], (C_OUT,), jnp.float32) * s,
        "l7_w1": jax.random.normal(ks[6], (C_OUT, A_HID), jnp.float32) * s,
        "l7_b1": jnp.zeros((A_HID,), jnp.float32),
        "l7_w2": jax.random.normal(ks[7], (A_HID, C_OUT), jnp.float32) * s,
        "l7_b2": jnp.zeros((C_OUT,), jnp.float32),
    }


def prepare_params(p):
    """Zero-pad output channels to lane-dense 128, keep hidden dims small,
    cast matmul weights to bf16 (padding is zero so results are unchanged);
    biases stay f32."""
    def pad2(a, rows, cols):
        return jnp.pad(a, ((0, rows - a.shape[0]), (0, cols - a.shape[1])))

    # (kH, kW, Cin, Cout) -> (4*Cin, Cout); row index = (ky*2+kx)*Cin + cin,
    # matching the wrapper's im2col tap order.
    w5 = p["l5_w"].reshape(K_COL, C_OUT)
    return {
        "w5": _bf16(pad2(w5, K_COL, CP)),
        "b5": pad2(p["l5_b"][None, :], 1, CP),
        "w61": _bf16(pad2(p["l6_w1"], CP, C_HID_P)),
        "b61": pad2(p["l6_b1"][None, :], 1, C_HID_P),
        "w62": _bf16(pad2(p["l6_w2"], C_HID_P, CP)),
        "b62": pad2(p["l6_b2"][None, :], 1, CP),
        "wa1": _bf16(pad2(p["l7_w1"], CP, A_HID)),
        "ba1": p["l7_b1"][None, :],
        "wa2": _bf16(pad2(p["l7_w2"], A_HID, CP)),
        "ba2": pad2(p["l7_b2"][None, :], 1, CP),
    }


# -----------------------------------------------------------------------------
# Full Ynet2B2 forward (NCHW interface, matching the PyTorch module)
# -----------------------------------------------------------------------------
@jax.jit
def ynet2b2_forward(x_nchw, prep):
    N, Cin, H, W = x_nchw.shape
    HO, WO = H + 1, W + 1            # conv k=2, s=1, p=1 output size
    # NCHW -> NHWC, spatial pad 1, full k=2 im2col -> (N, HO*WO, 256) bf16.
    x = jnp.transpose(x_nchw, (0, 2, 3, 1))
    xp = jnp.pad(x, ((0, 0), (1, 1), (1, 1), (0, 0)))
    taps = [xp[:, ky:ky + HO, kx:kx + WO, :] for ky in (0, 1) for kx in (0, 1)]
    xcol = jnp.concatenate(taps, axis=-1)                 # (N, HO, WO, 4*Cin)
    xcol = _bf16(xcol.reshape(N, HO * WO, K_COL))

    out = _fused_call(xcol, prep, HO * WO)                # (N, HO*WO, 128)
    out = out[:, :, :C_OUT].reshape(N, HO, WO, C_OUT)
    return jnp.transpose(out, (0, 3, 1, 2))               # back to NCHW


# -----------------------------------------------------------------------------
# Pure-JAX f32 reference (same assumed module semantics) for a sanity check.
# -----------------------------------------------------------------------------
def ynet2b2_reference(x_nchw, p):
    N, Cin, H, W = x_nchw.shape
    HO, WO = H + 1, W + 1
    x = jnp.transpose(x_nchw, (0, 2, 3, 1))
    xp = jnp.pad(x, ((0, 0), (1, 1), (1, 1), (0, 0)))
    taps = [xp[:, ky:ky + HO, kx:kx + WO, :] for ky in (0, 1) for kx in (0, 1)]
    xcol = jnp.concatenate(taps, axis=-1)
    w5 = p["l5_w"].reshape(K_COL, C_OUT)
    x5 = _silu(jnp.einsum("nhwk,kc->nhwc", xcol, w5) + p["l5_b"])
    h = _silu(jnp.einsum("nhwc,cd->nhwd", x5, p["l6_w1"]) + p["l6_b1"])
    y = _silu(jnp.einsum("nhwd,dc->nhwc", h, p["l6_w2"]) + p["l6_b2"])
    x6 = x5 + y
    pooled = jnp.max(x6, axis=(1, 2), keepdims=True)
    a = jnp.maximum(jnp.einsum("nxyc,cd->nxyd", pooled, p["l7_w1"]) + p["l7_b1"], 0.0)
    g = jax.nn.sigmoid(jnp.einsum("nxyd,dc->nxyc", a, p["l7_w2"]) + p["l7_b2"])
    return jnp.transpose(x6 * g, (0, 3, 1, 2))


if __name__ == "__main__":
    key = jax.random.PRNGKey(0)
    kx, kp = jax.random.split(key)
    # Batch=2, Cin=64 (required by Conv(64,...)), spatial 7x7 -> 8x8 after l5.
    x = jax.random.normal(kx, (2, C_IN, 7, 7), jnp.float32)
    params = init_params(kp)
    prep = prepare_params(params)

    out = ynet2b2_forward(x, prep)
    out = jax.block_until_ready(out)
    assert out.shape == (2, C_OUT, 8, 8), out.shape
    assert bool(jnp.all(jnp.isfinite(out)))

    # Numerical check vs pure-f32 reference (bf16 matmul operands -> loose tol).
    ref = ynet2b2_reference(x, params)
    max_err = float(jnp.max(jnp.abs(out - ref)))
    assert max_err < 0.08, max_err
    print("KERNEL_OK")
</pallas_src>

<mosaic_0001>
module attributes {stable_mosaic.version = 11 : i64} {
  func.func @_ynet2b2_kernel(%arg0: i32, %arg1: memref<1x64x256xbf16, #tpu.memory_space<vmem>>, %arg2: memref<256x128xbf16, #tpu.memory_space<vmem>>, %arg3: memref<1x128xf32, #tpu.memory_space<vmem>>, %arg4: memref<128x32xbf16, #tpu.memory_space<vmem>>, %arg5: memref<1x32xf32, #tpu.memory_space<vmem>>, %arg6: memref<32x128xbf16, #tpu.memory_space<vmem>>, %arg7: memref<1x128xf32, #tpu.memory_space<vmem>>, %arg8: memref<128x16xbf16, #tpu.memory_space<vmem>>, %arg9: memref<1x16xf32, #tpu.memory_space<vmem>>, %arg10: memref<16x128xbf16, #tpu.memory_space<vmem>>, %arg11: memref<1x128xf32, #tpu.memory_space<vmem>>, %arg12: memref<1x64x128xf32, #tpu.memory_space<vmem>>) attributes {dimension_semantics = [#tpu.dimension_semantics<parallel>], iteration_bounds = array<i64: 2>, scalar_prefetch = 0 : i64, scratch_operands = 0 : i64, tpu.core_type = #tpu.core_type<tc>, window_params = [{transform_indices = @transform_0, window_bounds = array<i64: 1, 64, 256>}, {pipeline_mode = #tpu.pipeline_mode<synchronous>, transform_indices = @transform_1, window_bounds = array<i64: 256, 128>}, {pipeline_mode = #tpu.pipeline_mode<synchronous>, transform_indices = @transform_2, window_bounds = array<i64: 1, 128>}, {pipeline_mode = #tpu.pipeline_mode<synchronous>, transform_indices = @transform_3, window_bounds = array<i64: 128, 32>}, {pipeline_mode = #tpu.pipeline_mode<synchronous>, transform_indices = @transform_4, window_bounds = array<i64: 1, 32>}, {pipeline_mode = #tpu.pipeline_mode<synchronous>, transform_indices = @transform_5, window_bounds = array<i64: 32, 128>}, {pipeline_mode = #tpu.pipeline_mode<synchronous>, transform_indices = @transform_6, window_bounds = array<i64: 1, 128>}, {pipeline_mode = #tpu.pipeline_mode<synchronous>, transform_indices = @transform_7, window_bounds = array<i64: 128, 16>}, {pipeline_mode = #tpu.pipeline_mode<synchronous>, transform_indices = @transform_8, window_bounds = array<i64: 1, 16>}, {pipeline_mode = #tpu.pipeline_mode<synchronous>, transform_indices = @transform_9, window_bounds = array<i64: 16, 128>}, {pipeline_mode = #tpu.pipeline_mode<synchronous>, transform_indices = @transform_10, window_bounds = array<i64: 1, 128>}, {transform_indices = @transform_11, window_bounds = array<i64: 1, 64, 128>}]} {
    %c0 = arith.constant 0 : index
    %c0_0 = arith.constant 0 : index
    %c0_1 = arith.constant 0 : index
    %0 = vector.load %arg1[%c0, %c0_0, %c0_1] : memref<1x64x256xbf16, #tpu.memory_space<vmem>>, vector<1x64x256xbf16>
    %1 = vector.shape_cast %0 : vector<1x64x256xbf16> to vector<64x256xbf16>
    %c0_2 = arith.constant 0 : index
    %c0_3 = arith.constant 0 : index
    %2 = vector.load %arg2[%c0_2, %c0_3] : memref<256x128xbf16, #tpu.memory_space<vmem>>, vector<256x128xbf16>
    %cst = arith.constant dense<0.000000e+00> : vector<64x128xf32>
    %3 = tpu.matmul %1, %2, %cst {dimension_numbers = #tpu.dot_dimension_numbers<[1], [0], [0], [1], [0, 0, 1, 1], [], []>} : vector<64x256xbf16>, vector<256x128xbf16>, vector<64x128xf32> -> vector<64x128xf32>
    %c0_4 = arith.constant 0 : index
    %c0_5 = arith.constant 0 : index
    %4 = vector.load %arg3[%c0_4, %c0_5] : memref<1x128xf32, #tpu.memory_space<vmem>>, vector<1x128xf32>
    %5 = vector.broadcast %4 : vector<1x128xf32> to vector<64x128xf32>
    %6 = arith.addf %3, %5 : vector<64x128xf32>
    %7 = arith.negf %6 : vector<64x128xf32>
    %8 = math.exp %7 : vector<64x128xf32>
    %cst_6 = arith.constant 1.000000e+00 : f32
    %9 = vector.broadcast %cst_6 : f32 to vector<64x128xf32>
    %10 = arith.addf %9, %8 : vector<64x128xf32>
    %11 = arith.divf %9, %10 : vector<64x128xf32>
    %12 = arith.mulf %6, %11 : vector<64x128xf32>
    %13 = arith.truncf %12 : vector<64x128xf32> to vector<64x128xbf16>
    %c0_7 = arith.constant 0 : index
    %c0_8 = arith.constant 0 : index
    %14 = vector.load %arg4[%c0_7, %c0_8] : memref<128x32xbf16, #tpu.memory_space<vmem>>, vector<128x32xbf16>
    %cst_9 = arith.constant dense<0.000000e+00> : vector<64x32xf32>
    %15 = tpu.matmul %13, %14, %cst_9 {dimension_numbers = #tpu.dot_dimension_numbers<[1], [0], [0], [1], [0, 0, 1, 1], [], []>} : vector<64x128xbf16>, vector<128x32xbf16>, vector<64x32xf32> -> vector<64x32xf32>
    %c0_10 = arith.constant 0 : index
    %c0_11 = arith.constant 0 : index
    %16 = vector.load %arg5[%c0_10, %c0_11] : memref<1x32xf32, #tpu.memory_space<vmem>>, vector<1x32xf32>
    %17 = vector.broadcast %16 : vector<1x32xf32> to vector<64x32xf32>
    %18 = arith.addf %15, %17 : vector<64x32xf32>
    %19 = arith.negf %18 : vector<64x32xf32>
    %20 = math.exp %19 : vector<64x32xf32>
    %cst_12 = arith.constant 1.000000e+00 : f32
    %21 = vector.broadcast %cst_12 : f32 to vector<64x32xf32>
    %22 = arith.addf %21, %20 : vector<64x32xf32>
    %23 = arith.divf %21, %22 : vector<64x32xf32>
    %24 = arith.mulf %18, %23 : vector<64x32xf32>
    %25 = arith.truncf %24 : vector<64x32xf32> to vector<64x32xbf16>
    %c0_13 = arith.constant 0 : index
    %c0_14 = arith.constant 0 : index
    %26 = vector.load %arg6[%c0_13, %c0_14] : memref<32x128xbf16, #tpu.memory_space<vmem>>, vector<32x128xbf16>
    %cst_15 = arith.constant dense<0.000000e+00> : vector<64x128xf32>
    %27 = tpu.matmul %25, %26, %cst_15 {dimension_numbers = #tpu.dot_dimension_numbers<[1], [0], [0], [1], [0, 0, 1, 1], [], []>} : vector<64x32xbf16>, vector<32x128xbf16>, vector<64x128xf32> -> vector<64x128xf32>
    %c0_16 = arith.constant 0 : index
    %c0_17 = arith.constant 0 : index
    %28 = vector.load %arg7[%c0_16, %c0_17] : memref<1x128xf32, #tpu.memory_space<vmem>>, vector<1x128xf32>
    %29 = vector.broadcast %28 : vector<1x128xf32> to vector<64x128xf32>
    %30 = arith.addf %27, %29 : vector<64x128xf32>
    %31 = arith.negf %30 : vector<64x128xf32>
    %32 = math.exp %31 : vector<64x128xf32>
    %cst_18 = arith.constant 1.000000e+00 : f32
    %33 = vector.broadcast %cst_18 : f32 to vector<64x128xf32>
    %34 = arith.addf %33, %32 : vector<64x128xf32>
    %35 = arith.divf %33, %34 : vector<64x128xf32>
    %36 = arith.mulf %30, %35 : vector<64x128xf32>
    %37 = arith.addf %12, %36 : vector<64x128xf32>
    %cst_19 = arith.constant dense<0xFF800000> : vector<128xf32>
    %38 = vector.multi_reduction <maximumf>, %37, %cst_19 [0] : vector<64x128xf32> to vector<128xf32>
    %39 = vector.shape_cast %38 : vector<128xf32> to vector<1x128xf32>
    %40 = arith.truncf %39 : vector<1x128xf32> to vector<1x128xbf16>
    %c0_20 = arith.constant 0 : index
    %c0_21 = arith.constant 0 : index
    %41 = vector.load %arg8[%c0_20, %c0_21] : memref<128x16xbf16, #tpu.memory_space<vmem>>, vector<128x16xbf16>
    %cst_22 = arith.constant dense<0.000000e+00> : vector<1x16xf32>
    %42 = tpu.matmul %40, %41, %cst_22 {dimension_numbers = #tpu.dot_dimension_numbers<[1], [0], [0], [1], [0, 0, 1, 1], [], []>} : vector<1x128xbf16>, vector<128x16xbf16>, vector<1x16xf32> -> vector<1x16xf32>
    %c0_23 = arith.constant 0 : index
    %c0_24 = arith.constant 0 : index
    %43 = vector.load %arg9[%c0_23, %c0_24] : memref<1x16xf32, #tpu.memory_space<vmem>>, vector<1x16xf32>
    %44 = arith.addf %42, %43 : vector<1x16xf32>
    %cst_25 = arith.constant 0.000000e+00 : f32
    %45 = vector.broadcast %cst_25 : f32 to vector<1x16xf32>
    %46 = arith.maximumf %44, %45 : vector<1x16xf32>
    %47 = arith.truncf %46 : vector<1x16xf32> to vector<1x16xbf16>
    %c0_26 = arith.constant 0 : index
    %c0_27 = arith.constant 0 : index
    %48 = vector.load %arg10[%c0_26, %c0_27] : memref<16x128xbf16, #tpu.memory_space<vmem>>, vector<16x128xbf16>
    %cst_28 = arith.constant dense<0.000000e+00> : vector<1x128xf32>
    %49 = tpu.matmul %47, %48, %cst_28 {dimension_numbers = #tpu.dot_dimension_numbers<[1], [0], [0], [1], [0, 0, 1, 1], [], []>} : vector<1x16xbf16>, vector<16x128xbf16>, vector<1x128xf32> -> vector<1x128xf32>
    %c0_29 = arith.constant 0 : index
    %c0_30 = arith.constant 0 : index
    %50 = vector.load %arg11[%c0_29, %c0_30] : memref<1x128xf32, #tpu.memory_space<vmem>>, vector<1x128xf32>
    %51 = arith.addf %49, %50 : vector<1x128xf32>
    %52 = arith.negf %51 : vector<1x128xf32>
    %53 = math.exp %52 : vector<1x128xf32>
    %cst_31 = arith.constant 1.000000e+00 : f32
    %54 = vector.broadcast %cst_31 : f32 to vector<1x128xf32>
    %55 = arith.addf %54, %53 : vector<1x128xf32>
    %56 = arith.divf %54, %55 : vector<1x128xf32>
    %57 = vector.broadcast %56 : vector<1x128xf32> to vector<64x128xf32>
    %58 = arith.mulf %37, %57 : vector<64x128xf32>
    %c0_32 = arith.constant 0 : index
    %c0_33 = arith.constant 0 : index
    %c0_34 = arith.constant 0 : index
    %59 = vector.load %arg12[%c0_32, %c0_33, %c0_34] : memref<1x64x128xf32, #tpu.memory_space<vmem>>, vector<1x64x128xf32>
    %60 = vector.shape_cast %59 : vector<1x64x128xf32> to vector<64x128xf32>
    %61 = vector.shape_cast %58 : vector<64x128xf32> to vector<1x64x128xf32>
    tpu.vector_store %arg12[%c0_32, %c0_33, %c0_34], %61 {strides = array<i32>} : memref<1x64x128xf32, #tpu.memory_space<vmem>>, vector<1x64x128xf32>,
    return
  }
  func.func @transform_0(%arg0: i32) -> (i32, i32, i32) {
    %c0_i32 = arith.constant 0 : i32
    %c0_i32_0 = arith.constant 0 : i32
    %c0_i32_1 = arith.constant 0 : i32
    return %arg0, %c0_i32, %c0_i32_0 : i32, i32, i32
  }
  func.func @transform_1(%arg0: i32) -> (i32, i32) {
    %c0_i32 = arith.constant 0 : i32
    %c0_i32_0 = arith.constant 0 : i32
    %c0_i32_1 = arith.constant 0 : i32
    return %c0_i32, %c0_i32_0 : i32, i32
  }
  func.func @transform_2(%arg0: i32) -> (i32, i32) {
    %c0_i32 = arith.constant 0 : i32
    %c0_i32_0 = arith.constant 0 : i32
    %c0_i32_1 = arith.constant 0 : i32
    return %c0_i32, %c0_i32_0 : i32, i32
  }
  func.func @transform_3(%arg0: i32) -> (i32, i32) {
    %c0_i32 = arith.constant 0 : i32
    %c0_i32_0 = arith.constant 0 : i32
    %c0_i32_1 = arith.constant 0 : i32
    return %c0_i32, %c0_i32_0 : i32, i32
  }
  func.func @transform_4(%arg0: i32) -> (i32, i32) {
    %c0_i32 = arith.constant 0 : i32
    %c0_i32_0 = arith.constant 0 : i32
    %c0_i32_1 = arith.constant 0 : i32
    return %c0_i32, %c0_i32_0 : i32, i32
  }
  func.func @transform_5(%arg0: i32) -> (i32, i32) {
    %c0_i32 = arith.constant 0 : i32
    %c0_i32_0 = arith.constant 0 : i32
    %c0_i32_1 = arith.constant 0 : i32
    return %c0_i32, %c0_i32_0 : i32, i32
  }
  func.func @transform_6(%arg0: i32) -> (i32, i32) {
    %c0_i32 = arith.constant 0 : i32
    %c0_i32_0 = arith.constant 0 : i32
    %c0_i32_1 = arith.constant 0 : i32
    return %c0_i32, %c0_i32_0 : i32, i32
  }
  func.func @transform_7(%arg0: i32) -> (i32, i32) {
    %c0_i32 = arith.constant 0 : i32
    %c0_i32_0 = arith.constant 0 : i32
    %c0_i32_1 = arith.constant 0 : i32
    return %c0_i32, %c0_i32_0 : i32, i32
  }
  func.func @transform_8(%arg0: i32) -> (i32, i32) {
    %c0_i32 = arith.constant 0 : i32
    %c0_i32_0 = arith.constant 0 : i32
    %c0_i32_1 = arith.constant 0 : i32
    return %c0_i32, %c0_i32_0 : i32, i32
  }
  func.func @transform_9(%arg0: i32) -> (i32, i32) {
    %c0_i32 = arith.constant 0 : i32
    %c0_i32_0 = arith.constant 0 : i32
    %c0_i32_1 = arith.constant 0 : i32
    return %c0_i32, %c0_i32_0 : i32, i32
  }
  func.func @transform_10(%arg0: i32) -> (i32, i32) {
    %c0_i32 = arith.constant 0 : i32
    %c0_i32_0 = arith.constant 0 : i32
    %c0_i32_1 = arith.constant 0 : i32
    return %c0_i32, %c0_i32_0 : i32, i32
  }
  func.func @transform_11(%arg0: i32) -> (i32, i32, i32) {
    %c0_i32 = arith.constant 0 : i32
    %c0_i32_0 = arith.constant 0 : i32
    %c0_i32_1 = arith.constant 0 : i32
    return %arg0, %c0_i32, %c0_i32_0 : i32, i32, i32
  }
}

</mosaic_0001>

<bundles_post_ra>
// kernel: ynet2b2_forward.1
= control target key start
LH: loop header
LB: loop body
LE: loop exit
PB: predicated region body
PF: predicated region fallthrough
CT: control target
= control target key end

     0   :  { %s1759_s17 = smov 0   ;;  %s1949_s0 = inlined_call_operand.vmem [shape: bf16[2,64,256], index: 0, kind: input, shape index: {}]   ;;  %s1950_s1 = inlined_call_operand.vmem [shape: bf16[256,128], index: 1, kind: input, shape index: {}]   ;;  %s1951_s2 = inlined_call_operand.vmem [shape: f32[1,128], index: 2, kind: input, shape index: {}]   ;;  %s1952_s3 = inlined_call_operand.vmem [shape: bf16[128,32], index: 3, kind: input, shape index: {}]   ;;  %s1953_s4 = inlined_call_operand.vmem [shape: f32[1,32], index: 4, kind: input, shape index: {}]   ;;  %s1954_s5 = inlined_call_operand.vmem [shape: bf16[32,128], index: 5, kind: input, shape index: {}]   ;;  %s1955_s6 = inlined_call_operand.vmem [shape: f32[1,128], index: 6, kind: input, shape index: {}]   ;;  %s1956_s7 = inlined_call_operand.vmem [shape: bf16[128,16], index: 7, kind: input, shape index: {}]   ;;  %s1957_s8 = inlined_call_operand.vmem [shape: f32[1,16], index: 8, kind: input, shape index: {}]   ;;  %s1958_s9 = inlined_call_operand.vmem [shape: bf16[16,128], index: 9, kind: input, shape index: {}]   ;;  %s1959_s10 = inlined_call_operand.vmem [shape: f32[1,128], index: 10, kind: input, shape index: {}]   ;;  %s1960_s11 = inlined_call_operand.vmem [shape: f32[2,64,128], index: 11, kind: output, shape index: {}]  }
   0x1 LB: > { %s1312_s18 = sadd.s32 4294967295, %s1695_s17   ;;  %p1316_p0 = scmp.ge.s32.totalorder %s1695_s17, 1  ;;  %s1695_s17 = sphi %s1759_s17, %s21_s17  }
   0x2   : > { %p337_p1 = scmp.lt.s32.totalorder %s1695_s17, 3 }
   0x4   : > { %p338_p2 = pnand %p1316_p0, %p337_p1 }
   0x5   : > { %v1542_v0 = vld [vmem:[%s1950_s1 + $0x40] sm:$0xff] (!%p338_p2)   ;;  %v1544_v2 = vld [vmem:[%s1950_s1 + $0x48] sm:$0xff] (!%p338_p2)   ;;  %p377_p3 = scmp.lt.s32.totalorder (!%p338_p2), %s1312_s18, 1  ;;  %v1546_v4 = vld [vmem:[%s1950_s1 + $0x50] sm:$0xff] (!%p338_p2)   ;;  %vm915_vm0 = vcmask (!%p338_p2), 261120   ;;  %vm1698_vm1 = vmmov (!%p338_p2), 0  }
   0x6   : > { %341 = sbr.rel (%p338_p2) target bundleno = 1293 (0x50d), region = 64  ;;  %v1543_v1 = vld [vmem:[%s1950_s1] sm:$0xff] (!%p338_p2)   ;;  %1401 = vmatprep.subr.bf16.mxu0 (!%p338_p2), %v1542_v0  ;;  %v1545_v3 = vld [vmem:[%s1950_s1 + $0x8] sm:$0xff] (!%p338_p2)   ;;  %v1547_v5 = vld [vmem:[%s1950_s1 + $0x10] sm:$0xff] (!%p338_p2)   ;;  %vm1187_vm2 = vcmask (!%p338_p2), 130048  }
   0x7   : > { %1402 = vmatpush3.bf16.msra.mxu0 (!%p338_p2), %v1543_v1  ;;  %v1548_v6 = vld [vmem:[%s1950_s1 + $0x58] sm:$0xff] (!%p338_p2)   ;;  %v1550_v8 = vld [vmem:[%s1950_s1 + $0x60] sm:$0xff] (!%p338_p2)   ;;  %v1552_v10 = vld [vmem:[%s1950_s1 + $0x68] sm:$0xff] (!%p338_p2)  }
   0x8   : > { %1403 = vmatprep.subr.bf16.mxu0 (!%p338_p2), %v1544_v2  ;;  %v1549_v7 = vld [vmem:[%s1950_s1 + $0x18] sm:$0xff] (!%p338_p2)   ;;  %v1551_v9 = vld [vmem:[%s1950_s1 + $0x20] sm:$0xff] (!%p338_p2)   ;;  %v1553_v12 = vld [vmem:[%s1950_s1 + $0x28] sm:$0xff] (!%p338_p2)  }
   0x9   : > { %v1554_v13 = vld [vmem:[%s1950_s1 + $0x70] sm:$0xff] (!%p338_p2)   ;;  %v1556_v15 = vld [vmem:[%s1950_s1 + $0x78] sm:$0xff] (!%p338_p2)   ;;  %v1570_v24 = vld [vmem:[%s1952_s3] sm:$0xff] (!%p338_p2)  }
   0xa   : > { %v1555_v14 = vld [vmem:[%s1950_s1 + $0x30] sm:$0xff] (!%p338_p2)   ;;  %v1557_v16 = vld [vmem:[%s1950_s1 + $0x38] sm:$0xff] (!%p338_p2)   ;;  %1470 = vmatprep.subr.bf16.mxu1 (!%p338_p2), %v1570_v24  ;;  %v1571_v25 = vld [vmem:[%s1952_s3 + $0x8] sm:$0xff] (!%p338_p2)  }
   0xb   : > { %1404 = vmatpush3.bf16.msra.mxu0 (!%p338_p2), %v1545_v3  ;;  %1471 = vmatpush3.bf16.msra.mxu1 (!%p338_p2), %v1570_v24  ;;  %v1572_v26 = vld [vmem:[%s1952_s3 + $0x10] sm:$0xff] (!%p338_p2)   ;;  %v1573_v27 = vld [vmem:[%s1952_s3 + $0x18] sm:$0xff] (!%p338_p2)   ;;  %v1574_v28 = vld [vmem:[%s1952_s3 + $0x20] sm:$0xff] (!%p338_p2)  }
   0xc   : > { %1405 = vmatprep.subr.bf16.mxu0 (!%p338_p2), %v1546_v4  ;;  %1472 = vmatprep.subr.bf16.mxu1 (!%p338_p2), %v1571_v25  ;;  %v1575_v29 = vld [vmem:[%s1952_s3 + $0x28] sm:$0xff] (!%p338_p2)   ;;  %v1576_v30 = vld [vmem:[%s1952_s3 + $0x30] sm:$0xff] (!%p338_p2)   ;;  %v1577_v31 = vld [vmem:[%s1952_s3 + $0x38] sm:$0xff] (!%p338_p2)  }
   0xd   : > { %s1962_s18 = smov (!%p377_p3, %s1312_s18), 1  ;;  %v1321_v33 = vld [vmem:[%s1951_s2] ss:$0 sm:$0xff] }
   0xe   : > { %s1399_s16 = sshll.u32 %s1962_s18, 6 }
   0xf   : > { %1406 = vmatpush3.bf16.msra.mxu0 %v1547_v5  ;;  %s1802_s23 = scalar_lea.vmem %s1949_s0, %s1399_s16  ;;  %1473 = vmatpush3.bf16.msra.mxu1 %v1571_v25  ;;  %s386_s25 = scalar_lea.vmem %s1960_s11, %s1399_s16 }
  0x10   : > { %1407 = vmatprep.subr.bf16.mxu0 %v1548_v6  ;;  %v1560_v11 = vld [vmem:[%s1802_s23 + $0x4] ss:$8 sps:$4 sm:$0xff]   ;;  %v1558_v17 = vld [vmem:[%s1802_s23] ss:$8 sps:$4 sm:$0xff]   ;;  %v1561_v18 = vld [vmem:[%s1802_s23 + $0x14] ss:$8 sps:$4 sm:$0xff]   ;;  %1474 = vmatprep.subr.bf16.mxu1 %v1572_v26 }
  0x11   : > { %603 = vmatprep.mubr.bf16.mxu0 %v1560_v11  ;;  %v1563_v19 = vld [vmem:[%s1802_s23 + $0x10] ss:$8 sps:$4 sm:$0xff]   ;;  %v1564_v20 = vld [vmem:[%s1802_s23 + $0x24] ss:$8 sps:$4 sm:$0xff]   ;;  %v1566_v21 = vld [vmem:[%s1802_s23 + $0x20] ss:$8 sps:$4 sm:$0xff]  }
  0x12   : > { %v1567_v22 = vld [vmem:[%s1802_s23 + $0x34] ss:$8 sps:$4 sm:$0xff]   ;;  %v1569_v23 = vld [vmem:[%s1802_s23 + $0x30] ss:$8 sps:$4 sm:$0xff]  }
  0x13   : > { %1408 = vmatpush3.bf16.msra.mxu0 %v1549_v7  ;;  %1475 = vmatpush3.bf16.msra.mxu1 %v1572_v26 }
  0x14   : > { %1409 = vmatprep.subr.bf16.mxu0 %v1550_v8  ;;  %1476 = vmatprep.subr.bf16.mxu1 %v1573_v27 }
  0x17   : > { %1410 = vmatpush3.bf16.msra.mxu0 %v1551_v9  ;;  %1477 = vmatpush3.bf16.msra.mxu1 %v1573_v27 }
  0x18   : > { %1411 = vmatprep.subr.bf16.mxu0 %v1552_v10  ;;  %1478 = vmatprep.subr.bf16.mxu1 %v1574_v28 }
  0x1b   : > { %1412 = vmatpush3.bf16.msra.mxu0 %v1553_v12  ;;  %1479 = vmatpush3.bf16.msra.mxu1 %v1574_v28 }
  0x1c   : > { %1413 = vmatprep.subr.bf16.mxu0 %v1554_v13  ;;  %1480 = vmatprep.subr.bf16.mxu1 %v1575_v29 }
  0x1f   : > { %1414 = vmatpush3.bf16.msra.mxu0 %v1555_v14  ;;  %1481 = vmatpush3.bf16.msra.mxu1 %v1575_v29 }
  0x20   : > { %1415 = vmatprep.subr.bf16.mxu0 %v1556_v15  ;;  %1482 = vmatprep.subr.bf16.mxu1 %v1576_v30 }
  0x23   : > { %1416 = vmatpush3.bf16.msra.mxu0 %v1557_v16  ;;  %1483 = vmatpush3.bf16.msra.mxu1 %v1576_v30 }
  0x24   : > { %1484 = vmatprep.subr.bf16.mxu1 %v1577_v31 }
  0x26   : > { %604 = vmatmul.mubr.bf16.vlgmr.msra.gmra.mrb[0].mxu0 %v1558_v17 }
  0x27   : > { %611 = vmatprep.mubr.bf16.mxu0 %v1561_v18  ;;  %1485 = vmatpush3.bf16.msra.mxu1 %v1577_v31 }
  0x2e   : > { %612 = vmatmul.mubr.bf16.gmra.mrb[4].mxu0 %v1563_v19 }
  0x2f   : > { %619 = vmatprep.mubr.bf16.mxu0 %v1564_v20 }
  0x36   : > { %620 = vmatmul.mubr.bf16.gmra.mrb[8].mxu0 %v1566_v21 }
  0x37   : > { %627 = vmatprep.mubr.bf16.mxu0 %v1567_v22 }
  0x3e   : > { %628 = vmatmul.mubr.bf16.gmra.mrb[12].mxu0 %v1569_v23 }
  0xf9   : > { %v1417_v32 = vpop.f32.mrb[0].mxu0 }
  0xfa   : > { %v1418_v34 = vpop.f32.mrb[1].mxu0 }
  0xfb   : > { %v1419_v35 = vadd.f32 %v1418_v34, %v1417_v32  ;;  %v1420_v36 = vpop.f32.mrb[2].mxu0 }
  0xfc   : > { %v1421_v37 = vpop.f32.mrb[3].mxu0 }
  0xfd   : > { %v606_v38 = vadd.f32 %v1419_v35, %v1321_v33  ;;  %v1422_v39 = vadd.f32 %v1421_v37, %v1420_v36 }
  0xff   : > { %v1346_v40 = vmul.f32 -1.442695, %v606_v38  ;;  %v609_v41 = vadd.f32 %v1422_v39, %v1321_v33 }
 0x101   : > { %1589 = vpow2.f32 %v1346_v40  ;;  %v1347_v42 = vmul.f32 -1.442695, %v609_v41  ;;  %v1423_v43 = vpop.f32.mrb[4].mxu0 }
 0x102   : > { %v1424_v44 = vpop.f32.mrb[5].mxu0 }
 0x103   : > { %1591 = vpow2.f32 %v1347_v42  ;;  %v1425_v45 = vadd.f32 %v1424_v44, %v1423_v43  ;;  %v1426_v46 = vpop.f32.mrb[6].mxu0 }
 0x104   : > { %v1427_v47 = vpop.f32.mrb[7].mxu0 }
 0x105   : > { %v614_v48 = vadd.f32 %v1425_v45, %v1321_v33  ;;  %v1428_v49 = vadd.f32 %v1427_v47, %v1426_v46  ;;  %v1578_v45 = vld [vmem:[%s1954_s5] sm:$0xff]   ;;  %v1579_v46 = vld [vmem:[%s1954_s5 + $0x8] sm:$0xff]  }
 0x106   : > { %1494 = vmatprep.subr.bf16.mxu1 %v1578_v45  ;;  %v1354_v47 = vld [vmem:[%s1953_s4] ss:$0 sm:$0xff] }
 0x107   : > { %v1348_v50 = vmul.f32 -1.442695, %v614_v48  ;;  %v617_v51 = vadd.f32 %v1428_v49, %v1321_v33 }
 0x109   : > { %1593 = vpow2.f32 %v1348_v50  ;;  %v1349_v52 = vmul.f32 -1.442695, %v617_v51  ;;  %v1429_v53 = vpop.f32.mrb[8].mxu0 }
 0x10a   : > { %v1430_v54 = vpop.f32.mrb[9].mxu0 }
 0x10b   : > { %v1590_v55 = vpop.eup %1589  ;;  %1595 = vpow2.f32 %v1349_v52  ;;  %v1431_v56 = vadd.f32 %v1430_v54, %v1429_v53  ;;  %v1432_v57 = vpop.f32.mrb[10].mxu0 }
 0x10c   : > { %v660_v58 = vadd.f32 1.0, %v1590_v55  ;;  %v1433_v59 = vpop.f32.mrb[11].mxu0 }
 0x10d   : > { %v1592_v60 = vpop.eup %1591  ;;  %v622_v61 = vadd.f32 %v1431_v56, %v1321_v33  ;;  %v1434_v62 = vadd.f32 %v1433_v59, %v1432_v57 }
 0x10e   : > { %1597 = vrcp.f32 %v660_v58  ;;  %v661_v63 = vadd.f32 1.0, %v1592_v60 }
 0x10f   : > { %v1350_v0 = vmul.f32 -1.442695, %v622_v61  ;;  %v625_v1 = vadd.f32 %v1434_v62, %v1321_v33 }
 0x110   : > { %1599 = vrcp.f32 %v661_v63 }
 0x111   : > { %1601 = vpow2.f32 %v1350_v0  ;;  %v1351_v2 = vmul.f32 -1.442695, %v625_v1  ;;  %v1435_v3 = vpop.f32.mrb[12].mxu0 }
 0x112   : > { %v1436_v4 = vpop.f32.mrb[13].mxu0 }
 0x113   : > { %v1594_v5 = vpop.eup %1593  ;;  %1603 = vpow2.f32 %v1351_v2  ;;  %v1437_v6 = vadd.f32 %v1436_v4, %v1435_v3  ;;  %v1438_v7 = vpop.f32.mrb[14].mxu0 }
 0x114   : > { %v662_v8 = vadd.f32 1.0, %v1594_v5  ;;  %v1439_v9 = vpop.f32.mrb[15].mxu0 }
 0x115   : > { %v1596_v10 = vpop.eup %1595  ;;  %v630_v11 = vadd.f32 %v1437_v6, %v1321_v33  ;;  %v1440_v12 = vadd.f32 %v1439_v9, %v1438_v7 }
 0x116   : > { %1605 = vrcp.f32 %v662_v8  ;;  %v663_v13 = vadd.f32 1.0, %v1596_v10 }
 0x117   : > { %v1352_v14 = vmul.f32 -1.442695, %v630_v11  ;;  %v633_v15 = vadd.f32 %v1440_v12, %v1321_v33 }
 0x118   : > { %v1598_v16 = vpop.eup %1597  ;;  %1607 = vrcp.f32 %v663_v13 }
 0x119   : > { %1609 = vpow2.f32 %v1352_v14  ;;  %v1353_v17 = vmul.f32 -1.442695, %v633_v15  ;;  %v1860_v20 = vmul.f32 %v1598_v16, %v606_v38 }
 0x11a   : > { %v1600_v18 = vpop.eup %1599 }
 0x11b   : > { %v1602_v19 = vpop.eup %1601  ;;  %1611 = vpow2.f32 %v1353_v17  ;;  %v1862_v21 = vmul.f32 %v1600_v18, %v609_v41 }
 0x11c   : > { %v664_v22 = vadd.f32 1.0, %v1602_v19 }
 0x11d   : > { %v1604_v23 = vpop.eup %1603  ;;  %v692_v24 = vpack.c.bf16 %v1862_v21, %v1860_v20 }
 0x11e   : > { %1613 = vrcp.f32 %v664_v22  ;;  %v665_v25 = vadd.f32 1.0, %v1604_v23 }
 0x11f   : > { %1486 = vmatprep.mubr.bf16.mxu1 %v692_v24 }
 0x120   : > { %v1606_v26 = vpop.eup %1605  ;;  %1615 = vrcp.f32 %v665_v25 }
 0x121   : > { %v1866_v29 = vmul.f32 %v1606_v26, %v614_v48 }
 0x122   : > { %v1608_v27 = vpop.eup %1607 }
 0x123   : > { %v1610_v28 = vpop.eup %1609  ;;  %v1868_v30 = vmul.f32 %v1608_v27, %v617_v51 }
 0x124   : > { %v666_v31 = vadd.f32 1.0, %v1610_v28 }
 0x125   : > { %v1612_v32 = vpop.eup %1611  ;;  %v693_v33 = vpack.c.bf16 %v1868_v30, %v1866_v29 }
 0x126   : > { %1617 = vrcp.f32 %v666_v31  ;;  %v667_v34 = vadd.f32 1.0, %v1612_v32 }
 0x127   : > { %1487 = vmatmul.mubr.bf16.vlgmr.msra.gmra.mrb[0].mxu1 %v693_v33 }
 0x128   : > { %v1614_v35 = vpop.eup %1613  ;;  %1619 = vrcp.f32 %v667_v34  ;;  %1495 = vmatpush3.bf16.msra.mxu1 %v1578_v45 }
 0x129   : > { %v1872_v37 = vmul.f32 %v1614_v35, %v622_v61  ;;  %1496 = vmatprep.subr.bf16.mxu1 %v1579_v46 }
 0x12a   : > { %v1616_v36 = vpop.eup %1615 }
 0x12b   : > { %v1874_v38 = vmul.f32 %v1616_v36, %v625_v1 }
 0x12c   : > { %1497 = vmatpush3.bf16.msra.mxu1 %v1579_v46 }
 0x12d   : > { %v694_v39 = vpack.c.bf16 %v1874_v38, %v1872_v37 }
 0x12f   : > { %1490 = vmatprep.mubr.bf16.mxu1 %v694_v39 }
 0x130   : > { %v1618_v40 = vpop.eup %1617 }
 0x131   : > { %v1878_v42 = vmul.f32 %v1618_v40, %v630_v11 }
 0x132   : > { %v1620_v41 = vpop.eup %1619 }
 0x133   : > { %v1880_v43 = vmul.f32 %v1620_v41, %v633_v15 }
 0x135   : > { %v695_v44 = vpack.c.bf16 %v1880_v43, %v1878_v42 }
 0x137   : > { %1491 = vmatmul.mubr.bf16.gmra.mrb[4].mxu1 %v695_v44 }
 0x1fa   : > { %v1488_v48 = vpop.f32.mrb[0].mxu1 }
 0x1fb   : > { %v810_v49 = vadd.f32 %v1488_v48, %v1354_v47  ;;  %v801_v50 = vpop.f32.mrb[1].mxu1 }
 0x1fc   : > { %v802_v51 = vadd.f32 %v1354_v47, %v801_v50  ;;  %v1489_v52 = vpop.f32.mrb[2].mxu1 }
 0x1fd   : > { %v1365_v53 = vmul.f32 -1.442695, %v810_v49  ;;  %v813_v54 = vadd.f32 %v1489_v52, %v1354_v47  ;;  %v804_v55 = vpop.f32.mrb[3].mxu1  ;;  %v1580_v52 = vld [vmem:[%s1956_s7] sm:$0xff]  }
 0x1fe   : > { %v1363_v56 = vmul.f32 -1.442695, %v802_v51  ;;  %v805_v57 = vadd.f32 %v1354_v47, %v804_v55  ;;  %v1582_v55 = vld [vmem:[%s1956_s7 + $0x10] sm:$0xff]  }
 0x1ff   : > { %1621 = vpow2.f32 %v1365_v53  ;;  %v1366_v58 = vmul.f32 -1.442695, %v813_v54  ;;  %v1697_v53 = vmov 0.0  }
 0x200   : > { %1623 = vpow2.f32 %v1363_v56  ;;  %v1364_v59 = vmul.f32 -1.442695, %v805_v57  ;;  %1506 = vmatprep.subr.bf16.mxu0 %v1697_v53  ;;  %1526 = vmatprep.subr.bf16.mxu1 %v1697_v53  ;;  %v1583_v56 = vld [vmem:[%s1956_s7 + $0x18] sm:$0xff]  }
 0x201   : > { %1625 = vpow2.f32 %v1366_v58  ;;  %1507 = vmatpush3.bf16.msra.mxu0 %v1580_v52  ;;  %v1585_v58 = vld [vmem:[%s1956_s7 + $0x28] sm:$0xff]   ;;  %1522 = vmatprep.mubr.msk.bf16.mxu0 %vm1698_vm1, %v1697_v53 }
 0x202   : > { %1627 = vpow2.f32 %v1364_v59  ;;  %1508 = vmatprep.subr.bf16.mxu0 %v1697_v53  ;;  %v1586_v59 = vld [vmem:[%s1956_s7 + $0x30] sm:$0xff]  }
 0x209   : > { %v1622_v60 = vpop.eup %1621 }
 0x20a   : > { %v1624_v61 = vpop.eup %1623  ;;  %v858_v62 = vadd.f32 1.0, %v1622_v60  ;;  %v1492_v63 = vpop.f32.mrb[4].mxu1  ;;  %v1587_v60 = vld [vmem:[%s1956_s7 + $0x38] sm:$0xff]  }
 0x20b   : > { %v1626_v0 = vpop.eup %1625  ;;  %v856_v1 = vadd.f32 1.0, %v1624_v61  ;;  %v826_v2 = vadd.f32 %v1492_v63, %v1354_v47  ;;  %v817_v3 = vpop.f32.mrb[5].mxu1  ;;  %v1588_v61 = vld [vmem:[%s1958_s9] sm:$0xff]  }
 0x20c   : > { %v1628_v4 = vpop.eup %1627  ;;  %1629 = vrcp.f32 %v858_v62  ;;  %v859_v5 = vadd.f32 1.0, %v1626_v0  ;;  %v818_v6 = vadd.f32 %v1354_v47, %v817_v3  ;;  %v1493_v7 = vpop.f32.mrb[6].mxu1 }
 0x20d   : > { %1631 = vrcp.f32 %v856_v1  ;;  %v857_v8 = vadd.f32 1.0, %v1628_v4  ;;  %v1369_v9 = vmul.f32 -1.442695, %v826_v2  ;;  %v829_v10 = vadd.f32 %v1493_v7, %v1354_v47  ;;  %v820_v11 = vpop.f32.mrb[7].mxu1  ;;  %v1371_v1 = vld [vmem:[%s1955_s6] ss:$0 sm:$0xff] }
 0x20e   : > { %1633 = vrcp.f32 %v859_v5  ;;  %v1367_v12 = vmul.f32 -1.442695, %v818_v6  ;;  %v821_v13 = vadd.f32 %v1354_v47, %v820_v11 }
 0x20f   : > { %1635 = vrcp.f32 %v857_v8  ;;  %v1370_v14 = vmul.f32 -1.442695, %v829_v10 }
 0x210   : > { %1637 = vpow2.f32 %v1369_v9  ;;  %v1368_v15 = vmul.f32 -1.442695, %v821_v13 }
 0x211   : > { %1639 = vpow2.f32 %v1367_v12 }
 0x212   : > { %1641 = vpow2.f32 %v1370_v14 }
 0x213   : > { %1643 = vpow2.f32 %v1368_v15 }
 0x216   : > { %v1630_v16 = vpop.eup %1629 }
 0x217   : > { %v1632_v17 = vpop.eup %1631  ;;  %v882_v22 = vmul.f32 %v1630_v16, %v810_v49 }
 0x218   : > { %v1634_v18 = vpop.eup %1633  ;;  %v880_v25 = vmul.f32 %v1632_v17, %v802_v51 }
 0x219   : > { %v1636_v19 = vpop.eup %1635  ;;  %v883_v23 = vmul.f32 %v1634_v18, %v813_v54  ;;  %v1581_v54 = vld [vmem:[%s1956_s7 + $0x8] sm:$0xff]  }
 0x21a   : > { %v1638_v24 = vpop.eup %1637  ;;  %v881_v26 = vmul.f32 %v1636_v19, %v805_v57  ;;  %1509 = vmatpush3.bf16.msra.mxu0 %v1581_v54  ;;  %v1584_v57 = vld [vmem:[%s1956_s7 + $0x20] sm:$0xff]  }
 0x21b   : > { %v1640_v27 = vpop.eup %1639  ;;  %v889_v28 = vpack.c.bf16 %v883_v23, %v882_v22  ;;  %v862_v31 = vadd.f32 1.0, %v1638_v24  ;;  %1510 = vmatprep.subr.bf16.mxu0 %v1697_v53 }
 0x21c   : > { %v1642_v32 = vpop.eup %1641  ;;  %v888_v33 = vpack.c.bf16 %v881_v26, %v880_v25  ;;  %v860_v34 = vadd.f32 1.0, %v1640_v27 }
 0x21d   : > { %v1644_v35 = vpop.eup %1643  ;;  %1645 = vrcp.f32 %v862_v31  ;;  %v863_v36 = vadd.f32 1.0, %v1642_v32 }
 0x21e   : > { %1647 = vrcp.f32 %v860_v34  ;;  %v861_v39 = vadd.f32 1.0, %v1644_v35  ;;  %1498 = vmatprep.mubr.msk.bf16.mxu1 %vm915_vm0, %v888_v33  ;;  %1511 = vmatpush3.bf16.msra.mxu0 %v1582_v55 }
 0x21f   : > { %1649 = vrcp.f32 %v863_v36  ;;  %1499 = vmatmul.mubr.msk.bf16.vlgmr.msra.gmra.mrb[8].mxu1 %vm915_vm0, %v889_v28  ;;  %1512 = vmatprep.subr.bf16.mxu0 %v1697_v53 }
 0x220   : > { %1651 = vrcp.f32 %v861_v39  ;;  %1527 = vmatpush3.bf16.msra.mxu1 %v1588_v61 }
 0x222   : > { %1513 = vmatpush3.bf16.msra.mxu0 %v1583_v56 }
 0x223   : > { %1514 = vmatprep.subr.bf16.mxu0 %v1697_v53 }
 0x226   : > { %1515 = vmatpush3.bf16.msra.mxu0 %v1584_v57 }
 0x227   : > { %v1646_v40 = vpop.eup %1645  ;;  %1516 = vmatprep.subr.bf16.mxu0 %v1697_v53 }
 0x228   : > { %v1648_v41 = vpop.eup %1647  ;;  %v886_v46 = vmul.f32 %v1646_v40, %v826_v2 }
 0x229   : > { %v1650_v44 = vpop.eup %1649  ;;  %v884_v48 = vmul.f32 %v1648_v41, %v818_v6 }
 0x22a   : > { %v1652_v45 = vpop.eup %1651  ;;  %v887_v47 = vmul.f32 %v1650_v44, %v829_v10  ;;  %1517 = vmatpush3.bf16.msra.mxu0 %v1585_v58 }
 0x22b   : > { %v885_v49 = vmul.f32 %v1652_v45, %v821_v13  ;;  %1518 = vmatprep.subr.bf16.mxu0 %v1697_v53 }
 0x22c   : > { %v891_v50 = vpack.c.bf16 %v887_v47, %v886_v46 }
 0x22d   : > { %v890_v51 = vpack.c.bf16 %v885_v49, %v884_v48 }
 0x22e   : > { %1519 = vmatpush3.bf16.msra.mxu0 %v1586_v59 }
 0x22f   : > { %1502 = vmatprep.mubr.msk.bf16.mxu1 %vm915_vm0, %v890_v51  ;;  %1520 = vmatprep.subr.bf16.mxu0 %v1697_v53 }
 0x230   : > { %1503 = vmatmul.mubr.msk.bf16.gmra.mrb[12].mxu1 %vm915_vm0, %v891_v50 }
 0x231   : > { %1528 = vmatprep.mubr.msk.bf16.mxu1 %vm1698_vm1, %v1697_v53 }
 0x232   : > { %1521 = vmatpush3.bf16.msra.mxu0 %v1587_v60 }
 0x2f2   : > { %v1500_v62 = vpop.f32.mrb[8].mxu1 }
 0x2f3   : > { %v962_v63 = vpop.f32.mrb[9].mxu1  ;;  %v971_v3 = vadd.f32 %v1500_v62, %v1371_v1 }
 0x2f4   : > { %v1501_v0 = vpop.f32.mrb[10].mxu1  ;;  %v963_v4 = vadd.f32 %v1371_v1, %v962_v63 }
 0x2f5   : > { %v965_v2 = vpop.f32.mrb[11].mxu1  ;;  %v974_v5 = vadd.f32 %v1501_v0, %v1371_v1  ;;  %v1380_v7 = vmul.f32 -1.442695, %v971_v3 }
 0x2f6   : > { %v966_v6 = vadd.f32 %v1371_v1, %v965_v2  ;;  %v1378_v8 = vmul.f32 -1.442695, %v963_v4 }
 0x2f7   : > { %v1381_v9 = vmul.f32 -1.442695, %v974_v5  ;;  %1653 = vpow2.f32 %v1380_v7 }
 0x2f8   : > { %v1379_v10 = vmul.f32 -1.442695, %v966_v6  ;;  %1655 = vpow2.f32 %v1378_v8 }
 0x2f9   : > { %1657 = vpow2.f32 %v1381_v9 }
 0x2fa   : > { %1659 = vpow2.f32 %v1379_v10 }
 0x301   : > { %v1654_v25 = vpop.eup %1653 }
 0x302   : > { %v1656_v26 = vpop.eup %1655  ;;  %v1019_v31 = vadd.f32 1.0, %v1654_v25 }
 0x303   : > { %v1504_v11 = vpop.f32.mrb[12].mxu1  ;;  %v1658_v27 = vpop.eup %1657  ;;  %v1017_v32 = vadd.f32 1.0, %v1656_v26 }
 0x304   : > { %v987_v12 = vadd.f32 %v1504_v11, %v1371_v1  ;;  %v978_v13 = vpop.f32.mrb[13].mxu1  ;;  %v1660_v28 = vpop.eup %1659  ;;  %v1020_v33 = vadd.f32 1.0, %v1658_v27 }
 0x305   : > { %v979_v14 = vadd.f32 %v1371_v1, %v978_v13  ;;  %v1505_v15 = vpop.f32.mrb[14].mxu1  ;;  %v1018_v34 = vadd.f32 1.0, %v1660_v28 }
 0x306   : > { %v1384_v16 = vmul.f32 -1.442695, %v987_v12  ;;  %v990_v17 = vadd.f32 %v1505_v15, %v1371_v1  ;;  %v981_v18 = vpop.f32.mrb[15].mxu1 }
 0x307   : > { %v1382_v19 = vmul.f32 -1.442695, %v979_v14  ;;  %v982_v22 = vadd.f32 %v1371_v1, %v981_v18 }
 0x308   : > { %1661 = vpow2.f32 %v1384_v16  ;;  %v1385_v23 = vmul.f32 -1.442695, %v990_v17 }
 0x309   : > { %1663 = vpow2.f32 %v1382_v19  ;;  %v1383_v24 = vmul.f32 -1.442695, %v982_v22 }
 0x30a   : > { %1665 = vpow2.f32 %v1385_v23  ;;  %v1180_v23 = vld [vmem:[%s1959_s10] sm:$0x1] }
 0x30b   : > { %1667 = vpow2.f32 %v1383_v24 }
 0x30c   : > { %1669 = vrcp.f32 %v1019_v31 }
 0x30d   : > { %1671 = vrcp.f32 %v1017_v32 }
 0x30e   : > { %1673 = vrcp.f32 %v1020_v33 }
 0x30f   : > { %1675 = vrcp.f32 %v1018_v34  ;;  %v1237_v34 = vlaneseq }
 0x312   : > { %v1662_v35 = vpop.eup %1661 }
 0x313   : > { %v1664_v36 = vpop.eup %1663  ;;  %v1023_v39 = vadd.f32 1.0, %v1662_v35  ;;  %v1238_v35 = vshrl.u32 %v1237_v34, 7 }
 0x314   : > { %v1666_v40 = vpop.eup %1665  ;;  %v1021_v41 = vadd.f32 1.0, %v1664_v36 }
 0x315   : > { %v1668_v44 = vpop.eup %1667  ;;  %1677 = vrcp.f32 %v1023_v39  ;;  %v1024_v45 = vadd.f32 1.0, %v1666_v40  ;;  %v1239_v36 = vsub.s32 0, %v1238_v35 }
 0x316   : > { %1679 = vrcp.f32 %v1021_v41  ;;  %v1022_v46 = vadd.f32 1.0, %v1668_v44  ;;  %v1670_v47 = vpop.eup %1669 }
 0x317   : > { %1681 = vrcp.f32 %v1024_v45  ;;  %v1672_v48 = vpop.eup %1671  ;;  %v1043_v53 = vmul.f32 %v1670_v47, %v971_v3 }
 0x318   : > { %1683 = vrcp.f32 %v1022_v46  ;;  %v1674_v49 = vpop.eup %1673  ;;  %v1041_v57 = vmul.f32 %v1672_v48, %v963_v4 }
 0x319   : > { %v1676_v50 = vpop.eup %1675  ;;  %v1044_v54 = vmul.f32 %v1674_v49, %v974_v5  ;;  %v1051_v1 = vadd.f32 %v1043_v53, %v1866_v29 }
 0x31a   : > { %v1042_v58 = vmul.f32 %v1676_v50, %v966_v6  ;;  %v1049_v3 = vadd.f32 %v1041_v57, %v1860_v20  ;;  %v1087_v20 = vld [vmem:[%s1957_s8] sm:$0x1] }
 0x31b   : > { %v1052_v2 = vadd.f32 %v1044_v54, %v1868_v30 }
 0x31c   : > { %v1050_v5 = vadd.f32 %v1042_v58, %v1862_v21 }
 0x31f   : > { %v1678_v51 = vpop.eup %1677 }
 0x320   : > { %v1680_v52 = vpop.eup %1679  ;;  %v1047_v55 = vmul.f32 %v1678_v51, %v987_v12 }
 0x321   : > { %v1682_v56 = vpop.eup %1681  ;;  %v1045_v59 = vmul.f32 %v1680_v52, %v979_v14 }
 0x322   : > { %v1684_v60 = vpop.eup %1683  ;;  %v1055_v61 = vadd.f32 %v1047_v55, %v1878_v42  ;;  %v1048_v62 = vmul.f32 %v1682_v56, %v990_v17 }
 0x323   : > { %v1053_v63 = vadd.f32 %v1045_v59, %v1872_v37  ;;  %v1046_v0 = vmul.f32 %v1684_v60, %v982_v22 }
 0x324   : > { %v1056_v7 = vadd.f32 %v1048_v62, %v1880_v43  ;;  %v1059_v6 = vmax.f32 %v1051_v1, %v1055_v61 }
 0x325   : > { %v1054_v4 = vadd.f32 %v1046_v0, %v1874_v38  ;;  %v1057_v9 = vmax.f32 %v1049_v3, %v1053_v63 }
 0x326   : > { %v1060_v8 = vmax.f32 %v1052_v2, %v1056_v7 }
 0x327   : > { %v1058_v42 = vmax.f32 %v1050_v5, %v1054_v4 }
 0x328   : > { %v1062_v10 = vmax.f32 %v1059_v6, %v1060_v8 }
 0x329   : > { %v1061_v11 = vmax.f32 %v1057_v9, %v1058_v42 }
 0x32b   : > { %v1063_v37 = vmax.f32 %v1061_v11, %v1062_v10 }
 0x32d   : > { %v1064_v12 = vrot.slane %v1063_v37, 4 }
 0x32f   : > { %v1065_v13 = vmax.f32 %v1063_v37, %v1064_v12 }
 0x331   : > { %v1066_v29 = vrot.slane %v1065_v13, 2 }
 0x333   : > { %v1067_v14 = vmax.f32 %v1065_v13, %v1066_v29 }
 0x335   : > { %v1068_v30 = vrot.slane %v1067_v14, 1 }
 0x337   : > { %v1069_v15 = vmax.f32 %v1067_v14, %v1068_v30 }
 0x339   : > { %v1070_v43 = vpack.c.bf16 %v1069_v15, %v1069_v15 }
 0x33b   : > { %1523 = vmatmul.mubr.bf16.vlgmr.msra.gmra.mrb[16].mxu0 %v1070_v43 }
 0x40e   : > { %v1170_v21 = vpop.f32.mrb[16].mxu0 }
 0x40f   : > { %v1171_v38 = vadd.f32 %v1170_v21, %v1087_v20  ;;  %v1524_v16 = vpop.f32.mrb[17].mxu0 }
 0x410   : > { %v1173_v17 = vpop.f32.mrb[18].mxu0 }
 0x411   : > { %v1176_v18 = vmax.f32 %v1171_v38, 0.0  ;;  %v1525_v19 = vpop.f32.mrb[19].mxu0 }
 0x413   : > { %v1177_v22 = vpack.c.bf16 %v1176_v18, %v1176_v18 }
 0x415   : > { %1529 = vmatmul.mubr.msk.bf16.vlgmr.msra.gmra.mrb[16].mxu1 %vm1187_vm2, %v1177_v22 }
 0x4e8   : > { %v1225_v24 = vpop.f32.mrb[16].mxu1 }
 0x4e9   : > { %v1226_v25 = vadd.f32 %v1225_v24, %v1180_v23  ;;  %v1530_v26 = vpop.f32.mrb[17].mxu1 }
 0x4ea   : > { %v1228_v27 = vpop.f32.mrb[18].mxu1 }
 0x4eb   : > { %v1396_v28 = vmul.f32 -1.442695, %v1226_v25  ;;  %v1531_v31 = vpop.f32.mrb[19].mxu1 }
 0x4ed   : > { %1685 = vpow2.f32 %v1396_v28 }
 0x4f7   : > { %v1686_v32 = vpop.eup %1685 }
 0x4f8   : > { %v1234_v33 = vadd.f32 1.0, %v1686_v32 }
 0x4fa   : > { %1687 = vrcp.f32 %v1234_v33 }
 0x504   : > { %v1688_v39 = vpop.eup %1687 }
 0x505   : > { %v1240_v40 = vrot.slane %v1688_v39, %v1239_v36 }
 0x507   : > { %v1241_v41 = vmul.f32 %v1240_v40, %v1049_v3  ;;  %v1242_v44 = vmul.f32 %v1240_v40, %v1050_v5  ;;  %v1243_v45 = vmul.f32 %v1240_v40, %v1051_v1  ;;  %v1244_v46 = vmul.f32 %v1240_v40, %v1052_v2 }
 0x508   : > { %v1245_v47 = vmul.f32 %v1240_v40, %v1053_v63  ;;  %v1246_v48 = vmul.f32 %v1240_v40, %v1054_v4  ;;  %v1247_v49 = vmul.f32 %v1240_v40, %v1055_v61  ;;  %v1248_v50 = vmul.f32 %v1240_v40, %v1056_v7 }
 0x509   : > { %1249 = vst [vmem:[%s386_s25] sm:$0xff] %v1241_v41  ;;  %1250 = vst [vmem:[%s386_s25 + $0x8] sm:$0xff] %v1242_v44 }
 0x50a   : > { %1251 = vst [vmem:[%s386_s25 + $0x10] sm:$0xff] %v1243_v45  ;;  %1252 = vst [vmem:[%s386_s25 + $0x18] sm:$0xff] %v1244_v46 }
 0x50b   : > { %1253 = vst [vmem:[%s386_s25 + $0x20] sm:$0xff] %v1245_v47  ;;  %1254 = vst [vmem:[%s386_s25 + $0x28] sm:$0xff] %v1246_v48 }
 0x50c   : > { %1255 = vst [vmem:[%s386_s25 + $0x30] sm:$0xff] %v1247_v49  ;;  %1256 = vst [vmem:[%s386_s25 + $0x38] sm:$0xff] %v1248_v50 }
 0x50d PF: > { %s21_s17 = sadd.s32 1, %s1695_s17  }
 0x50e   : > { %p18_p4 = scmp.ge.s32.totalorder %s21_s17, 4  }
 0x510   :  { %20 = sbr.rel (!%p18_p4) target bundleno = 1 (0x1), region = 94 }

</bundles_post_ra>
